<compile_context>
chip_gen: v7x
topology: tpu7x:2x2x1
jax: 0.10.0
libtpu: 0.0.40
codegen_flags: <defaults>
</compile_context>

<pallas_src>
import functools

import jax
import jax.numpy as jnp
from jax.experimental import pallas as pl
from jax.experimental.pallas import tpu as pltpu


def _round_up(x, m):
    return ((x + m - 1) // m) * m


def _auto_config():
    """Per-generation defaults: shard count (TensorCores) and max tile rows."""
    kind = ""
    try:
        kind = jax.devices()[0].device_kind.lower()
    except Exception:
        pass
    num_shards = 2 if "7" in kind else 1            # only v7x has 2 TCs/chip
    max_tile_rows = 4096 if "v5" in kind else 8192  # v5e: small scoped-VMEM default
    return num_shards, max_tile_rows


def _qfocal_kernel(pred_ref, true_ref, out_ref, *, gamma, c1, c2, row_tile,
                   chunk, lanes, steps, total_n, need_mask, approx):
    @pl.when(pl.program_id(1) == 0)
    def _():
        out_ref[...] = jnp.zeros_like(out_ref)

    nchunks = row_tile // chunk

    def chunk_body(i, carry):
        r0 = pl.multiple_of(i * chunk, chunk)
        x = pred_ref[pl.ds(r0, chunk), :].astype(jnp.float32)
        t = true_ref[pl.ds(r0, chunk), :].astype(jnp.float32)

        # One exp per element, reused for the stable BCE and for sigmoid.
        e = jnp.exp(-jnp.abs(x))                              # exp(-|x|)
        bce = jnp.maximum(x, 0.0) - x * t + jnp.log1p(e)      # BCE-with-logits
        if approx:
            inv = pl.reciprocal(1.0 + e, approx=True)         # EUP vrcp (idle slot)
        else:
            inv = 1.0 / (1.0 + e)
        p = jnp.where(x >= 0.0, inv, e * inv)                 # sigmoid(x), stable

        alpha_factor = t * c1 + c2                            # t*(2a-1) + (1-a)
        d = jnp.abs(t - p)
        if gamma == 1.5:
            mf = d * jnp.sqrt(d)                              # d**1.5, 1 EUP op
        elif gamma == 2.0:
            mf = d * d
        elif gamma == 1.0:
            mf = d
        else:
            mf = d ** gamma                                   # generic fallback

        loss = bce * alpha_factor * mf

        if need_mask:
            # Fallback only for gamma <= 0 where the (0, 0.5) padding trick
            # does not zero the padded loss.
            # TODO(synk): int32 flat index overflows for tensors >= 2^31 elems.
            row0 = (pl.program_id(0) * steps + pl.program_id(1)) * row_tile \
                + i * chunk
            ridx = jax.lax.broadcasted_iota(jnp.int32, (chunk, lanes), 0)
            cidx = jax.lax.broadcasted_iota(jnp.int32, (chunk, lanes), 1)
            loss = jnp.where((row0 + ridx) * lanes + cidx < total_n, loss, 0.0)

        # Fold (chunk,128) -> (8,128): pure VPU sublane-group adds, no XLU.
        out_ref[...] += loss.reshape(chunk // 8, 8, lanes).sum(axis=0)
        return carry

    if nchunks == 1:
        chunk_body(0, 0)
    else:
        jax.lax.fori_loop(0, nchunks, chunk_body, 0, unroll=nchunks <= 4)


def qfocal_loss(pred, true, gamma=1.5, alpha=0.25, *, reduction="mean",
                num_shards=None, max_tile_rows=None, approx_sigmoid=True,
                lanes=128):
    assert pred.shape == true.shape
    total_n = int(pred.size)

    auto_shards, auto_rows = _auto_config()
    if num_shards is None:
        num_shards = auto_shards
    if max_tile_rows is None:
        max_tile_rows = auto_rows

    # Sublane granularity: 8 rows for 4-byte dtypes, 16 for bf16, 32 for 1-byte.
    sub = 8
    for a in (pred, true):
        sub = max(sub, 32 // jnp.dtype(a.dtype).itemsize)

    rows_needed = pl.cdiv(total_n, lanes)
    rows_per_shard = pl.cdiv(rows_needed, num_shards)

    row_tile = max(sub, min(max_tile_rows, _round_up(rows_per_shard, sub)))
    if row_tile > 512:
        row_tile = _round_up(row_tile, 512)   # chunked accumulation granularity
        chunk = 512
    else:
        chunk = row_tile                      # whole tile in one chunk
    steps = pl.cdiv(rows_per_shard, row_tile)
    rows = num_shards * steps * row_tile
    padded = rows * lanes
    pad = padded - total_n

    flat_p = pred.reshape(-1)
    flat_t = true.reshape(-1)
    need_mask = False
    if pad:
        if gamma > 0:
            # sigmoid(0) = 0.5 and |0.5 - 0.5|**gamma = 0  =>  padded loss == 0,
            # so no in-kernel mask (no iota / compare / select per element).
            flat_p = jnp.pad(flat_p, (0, pad))
            flat_t = jnp.pad(flat_t, (0, pad), constant_values=0.5)
        else:
            flat_p = jnp.pad(flat_p, (0, pad))
            flat_t = jnp.pad(flat_t, (0, pad))
            need_mask = True
    pred2d = flat_p.reshape(rows, lanes)   # keep HBM dtype (bf16 ok) — no upcast
    true2d = flat_t.reshape(rows, lanes)

    kernel = functools.partial(
        _qfocal_kernel,
        gamma=float(gamma),
        c1=float(2.0 * alpha - 1.0), c2=float(1.0 - alpha),
        row_tile=row_tile, chunk=chunk, lanes=lanes, steps=steps,
        total_n=total_n, need_mask=need_mask, approx=bool(approx_sigmoid),
    )

    # VMEM budget: 2 inputs x 2 pipeline buffers + chunk intermediates/headroom.
    in_itemsize = (jnp.dtype(pred.dtype).itemsize
                   + jnp.dtype(true.dtype).itemsize)
    est_bytes = 2 * row_tile * lanes * in_itemsize + (6 << 20)
    vmem_limit = int(min(max(est_bytes, 20 << 20), 56 << 20))  # < v7x 64 MiB

    partials = pl.pallas_call(
        kernel,
        out_shape=jax.ShapeDtypeStruct((8, num_shards * lanes), jnp.float32),
        grid_spec=pltpu.PrefetchScalarGridSpec(
            num_scalar_prefetch=0,
            grid=(num_shards, steps),
            in_specs=[
                pl.BlockSpec((row_tile, lanes), lambda s, k: (s * steps + k, 0)),
                pl.BlockSpec((row_tile, lanes), lambda s, k: (s * steps + k, 0)),
            ],
            out_specs=pl.BlockSpec((8, lanes), lambda s, k: (0, s)),
        ),
        compiler_params=pltpu.CompilerParams(
            # TODO(synk): verify the leading axis engages both v7x TensorCores
            # (xprof); if not, switch to pltpu.CORE_PARALLEL / pl.core_map.
            dimension_semantics=("parallel", "arbitrary"),
            vmem_limit_bytes=vmem_limit,
        ),
    )(pred2d, true2d)

    total = jnp.sum(partials)               # one tiny cross-lane reduce in XLA
    if reduction == "mean":
        return total / total_n
    elif reduction == "sum":
        return total
    else:
        # TODO(synk): reduction='none' (elementwise output) not implemented.
        raise NotImplementedError("reduction='none' not supported in Pallas path")


def qfocal_loss_ref(pred, true, gamma=1.5, alpha=0.25):
    x = pred.astype(jnp.float32)
    t = true.astype(jnp.float32)
    bce = jnp.maximum(x, 0.0) - x * t + jnp.log1p(jnp.exp(-jnp.abs(x)))
    p = jax.nn.sigmoid(x)
    af = t * alpha + (1.0 - t) * (1.0 - alpha)
    mf = jnp.abs(t - p) ** gamma
    return jnp.mean(bce * af * mf)


if __name__ == "__main__":
    key = jax.random.PRNGKey(0)
    k1, k2, k3, k4 = jax.random.split(key, 4)

    # NCHW detection-head style logits / soft targets.
    shape = (2, 4, 16, 16)
    pred = jax.random.normal(k1, shape, dtype=jnp.float32)
    true = jax.random.uniform(k2, shape, dtype=jnp.float32)
    ref = qfocal_loss_ref(pred, true, gamma=1.5, alpha=0.25)

    # Exact-sigmoid path: tight tolerance.
    out_exact = jax.block_until_ready(
        qfocal_loss(pred, true, gamma=1.5, alpha=0.25, approx_sigmoid=False))
    assert jnp.allclose(out_exact, ref, rtol=1e-5, atol=1e-6), (out_exact, ref)

    # Default path (approx vrcp sigmoid): training-loss tolerance.
    out = jax.block_until_ready(qfocal_loss(pred, true, gamma=1.5, alpha=0.25))
    assert jnp.allclose(out, ref, rtol=2e-2, atol=1e-3), (out, ref)

    # Non-128-divisible element count: exercises the (0, 0.5) padding trick.
    shape2 = (3, 5, 7, 11)
    pred2 = jax.random.normal(k3, shape2, dtype=jnp.float32)
    true2 = jax.random.uniform(k4, shape2, dtype=jnp.float32)
    out2 = jax.block_until_ready(qfocal_loss(pred2, true2, approx_sigmoid=False))
    ref2 = qfocal_loss_ref(pred2, true2)
    assert jnp.allclose(out2, ref2, rtol=1e-5, atol=1e-6), (out2, ref2)

    # bf16 inputs streamed as bf16 from HBM (half the bandwidth), f32 compute.
    pred_bf = pred.astype(jnp.bfloat16)
    true_bf = true.astype(jnp.bfloat16)
    out_bf = jax.block_until_ready(
        qfocal_loss(pred_bf, true_bf, approx_sigmoid=False))
    ref_bf = qfocal_loss_ref(pred_bf.astype(jnp.float32),
                             true_bf.astype(jnp.float32))
    assert jnp.allclose(out_bf, ref_bf, rtol=1e-5, atol=1e-6), (out_bf, ref_bf)

    print("KERNEL_OK")
</pallas_src>

<mosaic_0001>
module attributes {stable_mosaic.version = 11 : i64} {
  func.func @_qfocal_kernel(%arg0: i32, %arg1: i32, %arg2: memref<16x128xf32, #tpu.memory_space<vmem>>, %arg3: memref<16x128xf32, #tpu.memory_space<vmem>>, %arg4: memref<8x128xf32, #tpu.memory_space<vmem>>) attributes {dimension_semantics = [#tpu.dimension_semantics<parallel>, #tpu.dimension_semantics<arbitrary>], iteration_bounds = array<i64: 1, 1>, scalar_prefetch = 0 : i64, scratch_operands = 0 : i64, tpu.core_type = #tpu.core_type<tc>, window_params = [{transform_indices = @transform_0, window_bounds = array<i64: 16, 128>}, {transform_indices = @transform_1, window_bounds = array<i64: 16, 128>}, {transform_indices = @transform_2, window_bounds = array<i64: 8, 128>}]} {
    %c0_i32 = arith.constant 0 : i32
    %0 = arith.cmpi eq, %arg1, %c0_i32 : i32
    %1 = arith.extui %0 : i1 to i32
    %c0_i32_0 = arith.constant 0 : i32
    %2 = arith.cmpi ne, %1, %c0_i32_0 : i32
    scf.if %2 {
      %cst_14 = arith.constant 0.000000e+00 : f32
      %41 = vector.broadcast %cst_14 : f32 to vector<8x128xf32>
      %c0_15 = arith.constant 0 : index
      %c0_16 = arith.constant 0 : index
      %42 = vector.load %arg4[%c0_15, %c0_16] : memref<8x128xf32, #tpu.memory_space<vmem>>, vector<8x128xf32>
      tpu.vector_store %arg4[%c0_15, %c0_16], %41 {strides = array<i32>} : memref<8x128xf32, #tpu.memory_space<vmem>>, vector<8x128xf32>,
    } else {
    }
    %c0_i32_1 = arith.constant 0 : i32
    %3 = tpu.assume_multiple %c0_i32_1, 16 : i32
    %4 = arith.index_cast %3 : i32 to index
    %c0 = arith.constant 0 : index
    %5 = vector.load %arg2[%4, %c0] : memref<16x128xf32, #tpu.memory_space<vmem>>, vector<16x128xf32>
    %6 = arith.index_cast %3 : i32 to index
    %c0_2 = arith.constant 0 : index
    %7 = vector.load %arg3[%6, %c0_2] : memref<16x128xf32, #tpu.memory_space<vmem>>, vector<16x128xf32>
    %8 = math.absf %5 : vector<16x128xf32>
    %cst = arith.constant 0.000000e+00 : f32
    %9 = vector.broadcast %cst : f32 to vector<16x128xf32>
    %10 = arith.subf %9, %8 : vector<16x128xf32>
    %11 = math.exp %10 : vector<16x128xf32>
    %cst_3 = arith.constant 0.000000e+00 : f32
    %12 = vector.broadcast %cst_3 : f32 to vector<16x128xf32>
    %13 = arith.maximumf %5, %12 : vector<16x128xf32>
    %14 = arith.mulf %5, %7 : vector<16x128xf32>
    %15 = arith.subf %13, %14 : vector<16x128xf32>
    %16 = math.log1p %11 : vector<16x128xf32>
    %17 = arith.addf %15, %16 : vector<16x128xf32>
    %cst_4 = arith.constant 1.000000e+00 : f32
    %18 = vector.broadcast %cst_4 : f32 to vector<16x128xf32>
    %19 = arith.addf %18, %11 : vector<16x128xf32>
    %cst_5 = arith.constant 1.000000e+00 : f32
    %20 = vector.broadcast %cst_5 : f32 to vector<16x128xf32>
    %21 = arith.divf %20, %19 : vector<16x128xf32>
    %cst_6 = arith.constant 0.000000e+00 : f32
    %22 = vector.broadcast %cst_6 : f32 to vector<16x128xf32>
    %23 = arith.cmpf oge, %5, %22 : vector<16x128xf32>
    %24 = arith.mulf %11, %21 : vector<16x128xf32>
    %25 = arith.select %23, %21, %24 : vector<16x128xi1>, vector<16x128xf32>
    %cst_7 = arith.constant -5.000000e-01 : f32
    %26 = vector.broadcast %cst_7 : f32 to vector<16x128xf32>
    %27 = arith.mulf %7, %26 : vector<16x128xf32>
    %cst_8 = arith.constant 7.500000e-01 : f32
    %28 = vector.broadcast %cst_8 : f32 to vector<16x128xf32>
    %29 = arith.addf %27, %28 : vector<16x128xf32>
    %30 = arith.subf %7, %25 : vector<16x128xf32>
    %31 = math.absf %30 : vector<16x128xf32>
    %32 = math.sqrt %31 : vector<16x128xf32>
    %33 = arith.mulf %31, %32 : vector<16x128xf32>
    %34 = arith.mulf %17, %29 : vector<16x128xf32>
    %35 = arith.mulf %34, %33 : vector<16x128xf32>
    %c0_9 = arith.constant 0 : index
    %c0_10 = arith.constant 0 : index
    %36 = vector.load %arg4[%c0_9, %c0_10] : memref<8x128xf32, #tpu.memory_space<vmem>>, vector<8x128xf32>
    %37 = vector.shape_cast %35 : vector<16x128xf32> to vector<2x8x128xf32>
    %cst_11 = arith.constant dense<0.000000e+00> : vector<8x128xf32>
    %38 = vector.multi_reduction <add>, %37, %cst_11 [0] : vector<2x8x128xf32> to vector<8x128xf32>
    %39 = arith.addf %36, %38 : vector<8x128xf32>
    %c0_12 = arith.constant 0 : index
    %c0_13 = arith.constant 0 : index
    %40 = vector.load %arg4[%c0_12, %c0_13] : memref<8x128xf32, #tpu.memory_space<vmem>>, vector<8x128xf32>
    tpu.vector_store %arg4[%c0_12, %c0_13], %39 {strides = array<i32>} : memref<8x128xf32, #tpu.memory_space<vmem>>, vector<8x128xf32>,
    return
  }
  func.func @transform_0(%arg0: i32, %arg1: i32) -> (i32, i32) {
    %c1_i32 = arith.constant 1 : i32
    %0 = arith.muli %arg0, %c1_i32 : i32
    %1 = arith.addi %0, %arg1 : i32
    %c0_i32 = arith.constant 0 : i32
    %c0_i32_0 = arith.constant 0 : i32
    return %1, %c0_i32 : i32, i32
  }
  func.func @transform_1(%arg0: i32, %arg1: i32) -> (i32, i32) {
    %c1_i32 = arith.constant 1 : i32
    %0 = arith.muli %arg0, %c1_i32 : i32
    %1 = arith.addi %0, %arg1 : i32
    %c0_i32 = arith.constant 0 : i32
    %c0_i32_0 = arith.constant 0 : i32
    return %1, %c0_i32 : i32, i32
  }
  func.func @transform_2(%arg0: i32, %arg1: i32) -> (i32, i32) {
    %c0_i32 = arith.constant 0 : i32
    %c0_i32_0 = arith.constant 0 : i32
    return %c0_i32, %arg0 : i32, i32
  }
}

</mosaic_0001>

<bundles_post_ra>
// kernel: tpu_custom_call.1
= control target key start
LH: loop header
LB: loop body
LE: loop exit
PB: predicated region body
PF: predicated region fallthrough
CT: control target
= control target key end

     0   :  { %7 = vsyncpa [#allocation3], 0  ;;  %s305_s0 = inlined_call_operand.hbm [shape: f32[16,128], index: 0, kind: input, shape index: {}]   ;;  %s306_s1 = inlined_call_operand.hbm [shape: f32[16,128], index: 1, kind: input, shape index: {}]   ;;  %s307_s2 = inlined_call_operand.hbm [shape: f32[8,128], index: 2, kind: output, shape index: {}]  }
   0x1   :  { %8 = vsyncpa [#allocation6], 0 }
   0x2   :  { %9 = vsyncpa [#allocation4], 0  ;;  %s249_s9 = smov [#allocation2]   ;;  %s177_s13 = scalar_lea.hbm %s305_s0, 256 }
   0x3   :  { %s19_s10 = sshll.u32 %s249_s9, 4  ;;  %p178_p0 = scmp.ne.s32.totalorder %s305_s0, %s177_s13  ;;  %s20_s10 = int_to_ptr.vmem [resolvable:$true] %s19_s10 }
   0x4   :  { %p181_p1 = scmp.lt.u32.totalorder %s177_s13, %s305_s0 }
   0x6   :  { %p183_p2 = pnand %p181_p1, %p178_p0 }
   0x8   :  { %186 = shalt.err (!%p183_p2)
}
   0x9   :  { %s187_s18 = scalar_lea.vmem %s20_s10, 256  ;;  %p192_p4 = scmp.lt.s32.totalorder %s20_s10, %s20_s10 }
   0xa   :  { %p188_p3 = scmp.ne.s32.totalorder %s20_s10, %s187_s18  ;;  %p193_p5 = scmp.lt.s32.totalorder %s187_s18, %s187_s18 }
   0xc   :  { %p194_p6 = por %p193_p5, %p192_p4 }
   0xe   :  { %p195_p7 = pnand %p194_p6, %p188_p3 }
  0x10   :  { %198 = shalt.err (!%p195_p7)
}
  0x11   :  { %s250_s19 = smov 128   ;;  %s251_s20 = smov 8  }
  0x12   :  { %25 = dma.hbm_to_vmem [thread:$0]  %s305_s0, 256, %s20_s10, [#allocation3], %s250_s19, %s250_s19, %s251_s20  }
  0x13   :  { %s252_s23 = smov [#allocation5]   ;;  %s199_s27 = scalar_lea.hbm %s306_s1, 256 }
  0x14   :  { %s35_s24 = sshll.u32 %s252_s23, 4  ;;  %p200_p8 = scmp.ne.s32.totalorder %s306_s1, %s199_s27  ;;  %s36_s24 = int_to_ptr.vmem [resolvable:$true] %s35_s24 }
  0x15   :  { %p203_p9 = scmp.lt.u32.totalorder %s199_s27, %s306_s1 }
  0x17   :  { %p205_p10 = pnand %p203_p9, %p200_p8 }
  0x19   :  { %208 = shalt.err (!%p205_p10)
}
  0x1a   :  { %s209_s4 = scalar_lea.vmem %s36_s24, 256  ;;  %p214_p12 = scmp.lt.s32.totalorder %s36_s24, %s36_s24 }
  0x1b   :  { %p210_p11 = scmp.ne.s32.totalorder %s36_s24, %s209_s4  ;;  %p215_p13 = scmp.lt.s32.totalorder %s209_s4, %s209_s4 }
  0x1d   :  { %p216_p0 = por %p215_p13, %p214_p12 }
  0x1f   :  { %p217_p1 = pnand %p216_p0, %p210_p11 }
  0x21   :  { %220 = shalt.err (!%p217_p1)
}
  0x22   :  { %41 = dma.hbm_to_vmem [thread:$0]  %s306_s1, 256, %s36_s24, [#allocation6], %s250_s19, %s250_s19, %s251_s20  }
  0x23   :  { %243 = dma.done.wait [#allocation3], 256  }
  0x24   :  { %244 = vsyncadd [#allocation3], 4294967040 }
  0x25   :  { %245 = dma.done.wait [#allocation6], 256  }
  0x26   :  { %246 = vsyncadd [#allocation6], 4294967040  ;;  %v57_v0 = vld [vmem:[#allocation2] sm:$0xff]  ;;  %v58_v1 = vld [vmem:[#allocation2 + $0x8] sm:$0xff]  ;;  %s253_s1 = smov [#allocation7]  }
  0x27   :  { %v61_v2 = vand.u32 2147483647, %v57_v0  ;;  %v62_v3 = vand.u32 2147483647, %v58_v1  ;;  %vm101_vm0 = vcmp.ge.f32.partialorder %v57_v0, 0.0  ;;  %v59_v14 = vld [vmem:[#allocation5] sm:$0xff] }
  0x28   :  { %vm102_vm1 = vcmp.ge.f32.partialorder %v58_v1, 0.0  ;;  %v60_v16 = vld [vmem:[#allocation5 + $0x8] sm:$0xff]  ;;  %v69_v32 = vmax.f32 %v57_v0, 0.0  ;;  %v71_v33 = vmul.f32 %v59_v14, %v57_v0  ;;  %v70_v34 = vmax.f32 %v58_v1, 0.0  ;;  %s145_s6 = sshll.u32 %s253_s1, 4  ;;  %s146_s6 = int_to_ptr.vmem [resolvable:$true] %s145_s6 }
  0x29   :  { %v63_v4 = vsub.f32 0.0, %v61_v2  ;;  %v64_v5 = vsub.f32 0.0, %v62_v3  ;;  %v72_v35 = vmul.f32 %v60_v16, %v58_v1  ;;  %v107_v41 = vmul.f32 -0.5, %v59_v14  ;;  %s221_s7 = scalar_lea.vmem %s146_s6, 128  ;;  %p226_p3 = scmp.lt.s32.totalorder %s146_s6, %s146_s6 }
  0x2a   :  { %v73_v40 = vsub.f32 %v69_v32, %v71_v33  ;;  %v108_v44 = vmul.f32 -0.5, %v60_v16  ;;  %p222_p2 = scmp.ne.s32.totalorder %s146_s6, %s221_s7  ;;  %p227_p4 = scmp.lt.s32.totalorder %s221_s7, %s221_s7 }
  0x2b   :  { %v65_v6 = vmul.f32 1.442695, %v63_v4  ;;  %v67_v7 = vmul.f32 1.442695, %v64_v5  ;;  %v74_v42 = vsub.f32 %v70_v34, %v72_v35  ;;  %v109_v47 = vadd.f32 0.75, %v107_v41 }
  0x2c   :  { %v110_v50 = vadd.f32 0.75, %v108_v44  ;;  %p228_p5 = por %p227_p4, %p226_p3 }
  0x2d   :  { %161 = vpow2.f32 %v65_v6 }
  0x2e   :  { %163 = vpow2.f32 %v67_v7  ;;  %p229_p6 = pnand %p228_p5, %p222_p2 }
  0x37   :  { %v162_v8 = vpop.eup %161 }
  0x38   :  { %v164_v9 = vpop.eup %163  ;;  %v75_v10 = vadd.f32 1.0, %v162_v8  ;;  %v78_v17 = vmul.f32 -0.5, %v162_v8  ;;  %v81_v27 = vand.u32 2147483647, %v162_v8 }
  0x39   :  { %v84_v11 = vadd.f32 1.0, %v164_v9  ;;  %v87_v19 = vmul.f32 -0.5, %v164_v9  ;;  %v90_v31 = vand.u32 2147483647, %v164_v9 }
  0x3a   :  { %165 = vrcp.f32 %v75_v10  ;;  %v79_v24 = vadd.f32 1.0, %v78_v17  ;;  %vm82_vm2 = vcmp.lt.f32.partialorder %v81_v27, 0.0004427343 }
  0x3b   :  { %167 = vrcp.f32 %v84_v11  ;;  %v88_v28 = vadd.f32 1.0, %v87_v19  ;;  %vm91_vm3 = vcmp.lt.f32.partialorder %v90_v31, 0.0004427343 }
  0x3c   :  { %169 = vlog2.f32 %v75_v10  ;;  %v80_v37 = vmul.f32 %v162_v8, %v79_v24 }
  0x3d   :  { %171 = vlog2.f32 %v84_v11  ;;  %v89_v39 = vmul.f32 %v164_v9, %v88_v28 }
  0x44   :  { %v166_v12 = vpop.eup %165 }
  0x45   :  { %v168_v13 = vpop.eup %167  ;;  %v103_v15 = vmul.f32 %v166_v12, %v162_v8 }
  0x46   :  { %v104_v18 = vmul.f32 %v168_v13, %v164_v9  ;;  %v170_v26 = vpop.eup %169 }
  0x47   :  { %v105_v20 = vsel %vm101_vm0, %v166_v12, %v103_v15  ;;  %v172_v30 = vpop.eup %171  ;;  %v77_v36 = vmul.f32 0.6931472, %v170_v26 }
  0x48   :  { %v106_v21 = vsel %vm102_vm1, %v168_v13, %v104_v18  ;;  %v111_v22 = vsub.f32 %v59_v14, %v105_v20  ;;  %v86_v38 = vmul.f32 0.6931472, %v172_v30 }
  0x49   :  { %v112_v23 = vsub.f32 %v60_v16, %v106_v21  ;;  %v83_v43 = vsel %vm82_vm2, %v80_v37, %v77_v36 }
  0x4a   :  { %v113_v25 = vand.u32 2147483647, %v111_v22  ;;  %v92_v45 = vsel %vm91_vm3, %v89_v39, %v86_v38  ;;  %v93_v46 = vadd.f32 %v83_v43, %v73_v40 }
  0x4b   :  { %v114_v29 = vand.u32 2147483647, %v112_v23  ;;  %v94_v49 = vadd.f32 %v92_v45, %v74_v42 }
  0x4c   :  { %173 = vrsqrt.f32 %v113_v25  ;;  %vm117_vm4 = vcmp.eq.f32.partialorder %v113_v25, inf  ;;  %v120_v51 = vand.u32 2147483648, %v113_v25  ;;  %vm119_vm5 = vcmp.eq.f32.partialorder %v113_v25, 0.0 }
  0x4d   :  { %175 = vrsqrt.f32 %v114_v29  ;;  %vm124_vm6 = vcmp.eq.f32.partialorder %v114_v29, inf  ;;  %v127_v54 = vand.u32 2147483648, %v114_v29  ;;  %vm126_vm7 = vcmp.eq.f32.partialorder %v114_v29, 0.0 }
  0x4e   :  { %v131_v57 = vmul.f32 %v109_v47, %v93_v46  ;;  %v132_v60 = vmul.f32 %v110_v50, %v94_v49 }
  0x56   :  { %v174_v48 = vpop.eup %173 }
  0x57   :  { %v176_v52 = vpop.eup %175  ;;  %v116_v53 = vmul.f32 %v174_v48, %v113_v25 }
  0x58   :  { %v123_v55 = vmul.f32 %v176_v52, %v114_v29 }
  0x59   :  { %v118_v56 = vsel %vm117_vm4, %v113_v25, %v116_v53 }
  0x5a   :  { %v121_v58 = vsel %vm119_vm5, %v120_v51, %v118_v56  ;;  %v125_v59 = vsel %vm124_vm6, %v114_v29, %v123_v55 }
  0x5b   :  { %v128_v61 = vsel %vm126_vm7, %v127_v54, %v125_v59  ;;  %v129_v62 = vmul.f32 %v121_v58, %v113_v25 }
  0x5c   :  { %v130_v63 = vmul.f32 %v128_v61, %v114_v29 }
  0x5d   :  { %v133_v0 = vmul.f32 %v131_v57, %v129_v62 }
  0x5e   :  { %v134_v1 = vmul.f32 %v132_v60, %v130_v63 }
  0x60   :  { %v136_v2 = vadd.f32 %v134_v1, %v133_v0 }
  0x62   :  { %138 = vst [vmem:[#allocation7] sm:$0xff] %v136_v2 }
  0x63   :  { %232 = shalt.err (!%p229_p6)
}
  0x64   :  { %s233_s10 = scalar_lea.hbm %s307_s2, 128 }
  0x65   :  { %p234_p7 = scmp.ne.s32.totalorder %s307_s2, %s233_s10  ;;  %p237_p8 = scmp.lt.u32.totalorder %s233_s10, %s307_s2 }
  0x67   :  { %p239_p9 = pnand %p237_p8, %p234_p7 }
  0x69   :  { %242 = shalt.err (!%p239_p9)
}
  0x6a   :  { %148 = dma.vmem_to_hbm [thread:$0]  %s146_s6, 128, %s307_s2, [#allocation4]  }
  0x6b   :  { %247 = dma.done.wait [#allocation4], 128  }
  0x6c   :  { %248 = vsyncadd [#allocation4], 4294967168 }
  0x6d   :  { %152 = vsyncpa [#allocation3], 1 }
  0x6e   :  { %153 = vsyncpa [#allocation6], 1 }
  0x6f   :  { %154 = vsyncpa [#allocation4], 1 }

</bundles_post_ra>
